<compile_context>
chip_gen: v7x
topology: tpu7x:2x2x1
jax: 0.10.0
libtpu: 0.0.40
codegen_flags: <defaults>
</compile_context>

<pallas_src>
import jax
import jax.numpy as jnp
from jax.experimental import pallas as pl
from jax.experimental.pallas import tpu as pltpu

EPS = 1e-5


def _layernorm_kernel(x_ref, gamma_ref, beta_ref, o_ref):
    x = x_ref[...].astype(jnp.float32)                    # (1, D, tl)
    d = x.shape[1]
    inv_d = 1.0 / d
    mean = jnp.sum(x, axis=1, keepdims=True) * inv_d      # (1, 1, tl) sublane reduce
    centered = x - mean
    var = jnp.sum(centered * centered, axis=1, keepdims=True) * inv_d
    inv = jax.lax.rsqrt(var + EPS)                         # (1, 1, tl), EUP
    gamma = gamma_ref[...][None]                           # (1, D, 1)
    beta = beta_ref[...][None]                             # (1, D, 1)
    scale = inv * gamma                                    # fold gamma into inv
    o_ref[...] = (centered * scale + beta).astype(o_ref.dtype)


def _choose_tl(L, D, B, max_block_bytes):
    """Largest lane tile tl that divides L, is a multiple of 128 (or == L) and
    keeps one f32 (D, tl) block under max_block_bytes."""
    if L % 128 != 0 or L <= 128:
        # Full-L block is always a legal BlockSpec (last dim == array dim).
        # TODO(synk): pad L to a multiple of 128 if it is ever both huge and
        # not 128-divisible, so the block can still be tiled.
        return L
    cap = max(128, (max_block_bytes // (D * 4)) // 128 * 128)
    limit = min(L, cap)
    if B == 1:
        # Keep at least 2 grid steps so v7x's 2 TensorCores both get work.
        limit = min(limit, max(128, (L // 2) // 128 * 128))
    best = 128
    m = 128
    while m <= limit:
        if L % m == 0:
            best = m
        m += 128
    return best


def norm_forward(x, gamma, beta, *, max_block_bytes=2 * 1024 * 1024):
    """x: (B, D, L). LayerNorm over D in native layout. Returns (B, D, L)."""
    B, D, L = x.shape
    tl = _choose_tl(L, D, B, max_block_bytes)
    assert L % tl == 0

    gamma2 = gamma.reshape(D, 1).astype(jnp.float32)
    beta2 = beta.reshape(D, 1).astype(jnp.float32)

    return pl.pallas_call(
        _layernorm_kernel,
        out_shape=jax.ShapeDtypeStruct((B, D, L), x.dtype),
        grid_spec=pltpu.PrefetchScalarGridSpec(
            num_scalar_prefetch=0,
            grid=(B, L // tl),
            in_specs=[
                pl.BlockSpec((1, D, tl), lambda b, l: (b, 0, l)),
                pl.BlockSpec((D, 1), lambda b, l: (0, 0)),
                pl.BlockSpec((D, 1), lambda b, l: (0, 0)),
            ],
            out_specs=pl.BlockSpec((1, D, tl), lambda b, l: (b, 0, l)),
        ),
        compiler_params=pltpu.CompilerParams(
            dimension_semantics=("parallel", "parallel")),
    )(x, gamma2, beta2)


def _reference(x, gamma, beta):
    xt = jnp.transpose(x, (0, 2, 1))
    mean = jnp.mean(xt, axis=-1, keepdims=True)
    var = jnp.mean((xt - mean) ** 2, axis=-1, keepdims=True)
    y = (xt - mean) / jnp.sqrt(var + EPS) * gamma + beta
    return jnp.transpose(y, (0, 2, 1))


if __name__ == "__main__":
    key = jax.random.PRNGKey(0)
    k1, k2, k3 = jax.random.split(key, 3)

    # Case 1: module-default init (weight=1, bias=0), tiny seq length.
    B, D, L = 2, 128, 8
    x = jax.random.normal(k1, (B, D, L), dtype=jnp.float32)
    gamma = jnp.ones((D,), dtype=jnp.float32)
    beta = jnp.zeros((D,), dtype=jnp.float32)
    out = jax.block_until_ready(norm_forward(x, gamma, beta))
    ref = _reference(x, gamma, beta)
    assert out.shape == (B, D, L)
    assert jnp.allclose(out, ref, atol=2e-5, rtol=2e-5)

    # Case 2: non-trivial affine params and a lane-dense (128-multiple) L to
    # exercise the tiled, unmasked-store path.
    B2, D2, L2 = 2, 128, 256
    x2 = jax.random.normal(k2, (B2, D2, L2), dtype=jnp.float32)
    gamma2 = 1.0 + 0.1 * jax.random.normal(k3, (D2,), dtype=jnp.float32)
    beta2 = 0.1 * jax.random.normal(jax.random.PRNGKey(7), (D2,), dtype=jnp.float32)
    out2 = jax.block_until_ready(norm_forward(x2, gamma2, beta2))
    ref2 = _reference(x2, gamma2, beta2)
    assert jnp.allclose(out2, ref2, atol=2e-5, rtol=2e-5)

    print("KERNEL_OK")
</pallas_src>

<mosaic_0001>
module attributes {stable_mosaic.version = 11 : i64} {
  func.func @_layernorm_kernel(%arg0: i32, %arg1: i32, %arg2: memref<1x128x8xf32, #tpu.memory_space<vmem>>, %arg3: memref<128x1xf32, #tpu.memory_space<vmem>>, %arg4: memref<128x1xf32, #tpu.memory_space<vmem>>, %arg5: memref<1x128x8xf32, #tpu.memory_space<vmem>>) attributes {dimension_semantics = [#tpu.dimension_semantics<parallel>, #tpu.dimension_semantics<parallel>], iteration_bounds = array<i64: 2, 1>, scalar_prefetch = 0 : i64, scratch_operands = 0 : i64, tpu.core_type = #tpu.core_type<tc>, window_params = [{transform_indices = @transform_0, window_bounds = array<i64: 1, 128, 8>}, {pipeline_mode = #tpu.pipeline_mode<synchronous>, transform_indices = @transform_1, window_bounds = array<i64: 128, 1>}, {pipeline_mode = #tpu.pipeline_mode<synchronous>, transform_indices = @transform_2, window_bounds = array<i64: 128, 1>}, {transform_indices = @transform_3, window_bounds = array<i64: 1, 128, 8>}]} {
    %c0 = arith.constant 0 : index
    %c0_0 = arith.constant 0 : index
    %c0_1 = arith.constant 0 : index
    %0 = vector.load %arg2[%c0, %c0_0, %c0_1] : memref<1x128x8xf32, #tpu.memory_space<vmem>>, vector<1x128x8xf32>
    %cst = arith.constant dense<0.000000e+00> : vector<1x8xf32>
    %1 = vector.multi_reduction <add>, %0, %cst [1] : vector<1x128x8xf32> to vector<1x8xf32>
    %2 = vector.shape_cast %1 : vector<1x8xf32> to vector<1x1x8xf32>
    %cst_2 = arith.constant 7.812500e-03 : f32
    %3 = vector.broadcast %cst_2 : f32 to vector<1x1x8xf32>
    %4 = arith.mulf %2, %3 : vector<1x1x8xf32>
    %5 = vector.broadcast %4 : vector<1x1x8xf32> to vector<1x128x8xf32>
    %6 = arith.subf %0, %5 : vector<1x128x8xf32>
    %7 = arith.mulf %6, %6 : vector<1x128x8xf32>
    %cst_3 = arith.constant dense<0.000000e+00> : vector<1x8xf32>
    %8 = vector.multi_reduction <add>, %7, %cst_3 [1] : vector<1x128x8xf32> to vector<1x8xf32>
    %9 = vector.shape_cast %8 : vector<1x8xf32> to vector<1x1x8xf32>
    %cst_4 = arith.constant 7.812500e-03 : f32
    %10 = vector.broadcast %cst_4 : f32 to vector<1x1x8xf32>
    %11 = arith.mulf %9, %10 : vector<1x1x8xf32>
    %cst_5 = arith.constant 9.99999974E-6 : f32
    %12 = vector.broadcast %cst_5 : f32 to vector<1x1x8xf32>
    %13 = arith.addf %11, %12 : vector<1x1x8xf32>
    %14 = math.rsqrt %13 : vector<1x1x8xf32>
    %c0_6 = arith.constant 0 : index
    %c0_7 = arith.constant 0 : index
    %15 = vector.load %arg3[%c0_6, %c0_7] : memref<128x1xf32, #tpu.memory_space<vmem>>, vector<128x1xf32>
    %16 = vector.shape_cast %15 : vector<128x1xf32> to vector<1x128x1xf32>
    %c0_8 = arith.constant 0 : index
    %c0_9 = arith.constant 0 : index
    %17 = vector.load %arg4[%c0_8, %c0_9] : memref<128x1xf32, #tpu.memory_space<vmem>>, vector<128x1xf32>
    %18 = vector.shape_cast %17 : vector<128x1xf32> to vector<1x128x1xf32>
    %19 = vector.broadcast %14 : vector<1x1x8xf32> to vector<1x128x8xf32>
    %20 = vector.broadcast %16 : vector<1x128x1xf32> to vector<1x128x8xf32>
    %21 = arith.mulf %19, %20 : vector<1x128x8xf32>
    %22 = arith.mulf %6, %21 : vector<1x128x8xf32>
    %23 = vector.broadcast %18 : vector<1x128x1xf32> to vector<1x128x8xf32>
    %24 = arith.addf %22, %23 : vector<1x128x8xf32>
    %c0_10 = arith.constant 0 : index
    %c0_11 = arith.constant 0 : index
    %c0_12 = arith.constant 0 : index
    %25 = vector.load %arg5[%c0_10, %c0_11, %c0_12] : memref<1x128x8xf32, #tpu.memory_space<vmem>>, vector<1x128x8xf32>
    tpu.vector_store %arg5[%c0_10, %c0_11, %c0_12], %24 {strides = array<i32>} : memref<1x128x8xf32, #tpu.memory_space<vmem>>, vector<1x128x8xf32>,
    return
  }
  func.func @transform_0(%arg0: i32, %arg1: i32) -> (i32, i32, i32) {
    %c0_i32 = arith.constant 0 : i32
    %c0_i32_0 = arith.constant 0 : i32
    return %arg0, %c0_i32, %arg1 : i32, i32, i32
  }
  func.func @transform_1(%arg0: i32, %arg1: i32) -> (i32, i32) {
    %c0_i32 = arith.constant 0 : i32
    %c0_i32_0 = arith.constant 0 : i32
    %c0_i32_1 = arith.constant 0 : i32
    return %c0_i32, %c0_i32_0 : i32, i32
  }
  func.func @transform_2(%arg0: i32, %arg1: i32) -> (i32, i32) {
    %c0_i32 = arith.constant 0 : i32
    %c0_i32_0 = arith.constant 0 : i32
    %c0_i32_1 = arith.constant 0 : i32
    return %c0_i32, %c0_i32_0 : i32, i32
  }
  func.func @transform_3(%arg0: i32, %arg1: i32) -> (i32, i32, i32) {
    %c0_i32 = arith.constant 0 : i32
    %c0_i32_0 = arith.constant 0 : i32
    return %arg0, %c0_i32, %arg1 : i32, i32, i32
  }
}

</mosaic_0001>

<bundles_post_ra>
// kernel: tpu_custom_call.1
= control target key start
LH: loop header
LB: loop body
LE: loop exit
PB: predicated region body
PF: predicated region fallthrough
CT: control target
= control target key end

     0   :  { %s755_s12 = smov 0   ;;  %s757_s13 = smov 0   ;;  %s1137_s0 = inlined_call_operand.vmem [shape: f32[2,128,8], index: 0, kind: input, shape index: {}]   ;;  %s1138_s1 = inlined_call_operand.vmem [shape: f32[128,1], index: 1, kind: input, shape index: {}]   ;;  %s1139_s2 = inlined_call_operand.vmem [shape: f32[128,1], index: 2, kind: input, shape index: {}]   ;;  %s1140_s3 = inlined_call_operand.vmem [shape: f32[2,128,8], index: 3, kind: output, shape index: {}]  }
   0x1   :  { %s759_s14 = smov 0  }
   0x2 LB: > { %s25_s15 = sadd.s32 1, %s728_s13  ;;  %p672_p0 = scmp.ge.s32.totalorder %s732_s14, 1  ;;  %s732_s14 = sphi %s759_s14, %s13_s14   ;;  %s728_s13 = sphi %s757_s13, %s1142_s13   ;;  %s724_s12 = sphi %s755_s12, %s1141_s12  }
   0x3   : > { %p27_p1 = scmp.ge.s32.totalorder %s25_s15, 2  ;;  %p156_p2 = scmp.lt.s32.totalorder %s732_s14, 3 }
   0x5   : > { %s1144_s15 = smov (%p27_p1, %s25_s15), 0  ;;  %p157_p3 = pnand %p672_p0, %p156_p2 }
   0x6   : > { %v331_v0 = vld [vmem:[%s1138_s1 + $0x10] sm:$0xff] (!%p157_p3)  ;;  %v329_v1 = vld [vmem:[%s1138_s1] sm:$0xff] (!%p157_p3)  ;;  %p186_p4 = scmp.lt.s32.totalorder (!%p157_p3), %s724_s12, 1  ;;  %v734_v2 = vmov (!%p157_p3), 0   ;;  %v332_v3 = vld [vmem:[%s1138_s1 + $0x18] sm:$0xff] (!%p157_p3)  ;;  %vm218_vm0 = vcmask (!%p157_p3), 64512  }
   0x7   : > { %160 = sbr.rel (%p157_p3) target bundleno = 199 (0xc7), region = 32  ;;  %707 = vset.pattern.permute.xlu1 (!%p157_p3), %v734_v2  ;;  %706 = vset.pattern.permute.xlu0 (!%p157_p3), %v734_v2  ;;  %v330_v4 = vld [vmem:[%s1138_s1 + $0x8] sm:$0xff] (!%p157_p3)  ;;  %v333_v6 = vld [vmem:[%s1138_s1 + $0x20] sm:$0xff] (!%p157_p3)  ;;  %v336_v7 = vld [vmem:[%s1138_s1 + $0x38] sm:$0xff] (!%p157_p3) }
   0x8   : > { %373 = vperm.xlu1 (!%p157_p3), %707, %v331_v0   ;;  %363 = vperm.xlu0 (!%p157_p3), %706, %v329_v1   ;;  %v334_v5 = vld [vmem:[%s1138_s1 + $0x28] sm:$0xff] (!%p157_p3)  ;;  %v335_v8 = vld [vmem:[%s1138_s1 + $0x30] sm:$0xff] (!%p157_p3)  ;;  %v337_v20 = vld [vmem:[%s1138_s1 + $0x40] sm:$0xff] (!%p157_p3) }
   0x9   : > { %v338_v19 = vld [vmem:[%s1138_s1 + $0x48] sm:$0xff] (!%p157_p3)  ;;  %v340_v27 = vld [vmem:[%s1138_s1 + $0x58] sm:$0xff] (!%p157_p3)  ;;  %v339_v28 = vld [vmem:[%s1138_s1 + $0x50] sm:$0xff] (!%p157_p3) }
   0xa   : > { %v342_v35 = vld [vmem:[%s1138_s1 + $0x68] sm:$0xff] (!%p157_p3)  ;;  %v341_v36 = vld [vmem:[%s1138_s1 + $0x60] sm:$0xff] (!%p157_p3)  ;;  %v344_v43 = vld [vmem:[%s1138_s1 + $0x78] sm:$0xff] (!%p157_p3) }
   0xb   : > { %v343_v44 = vld [vmem:[%s1138_s1 + $0x70] sm:$0xff] (!%p157_p3)  ;;  %v346_v51 = vld [vmem:[%s1139_s2 + $0x8] sm:$0xff] (!%p157_p3)  ;;  %v345_v52 = vld [vmem:[%s1139_s2] sm:$0xff] (!%p157_p3) }
   0xc   : > { %378 = vperm.xlu1 (!%p157_p3), %707, %v332_v3   ;;  %368 = vperm.xlu0 (!%p157_p3), %706, %v330_v4   ;;  %v348_v59 = vld [vmem:[%s1139_s2 + $0x18] sm:$0xff] (!%p157_p3)  ;;  %v347_v60 = vld [vmem:[%s1139_s2 + $0x10] sm:$0xff] (!%p157_p3)  ;;  %v350_v2 = vld [vmem:[%s1139_s2 + $0x28] sm:$0xff] (!%p157_p3) }
   0xd   : > { %v349_v3 = vld [vmem:[%s1139_s2 + $0x20] sm:$0xff] (!%p157_p3) }
   0xe   : > { %s1146_s12 = smov (!%p186_p4, %s724_s12), 1 }
   0xf   : > { %s679_s24 = sshll.u32 %s1146_s12, 7 }
  0x10   : > { %s799_s4 = scalar_lea.vmem %s1137_s0, %s679_s24  ;;  %388 = vperm.xlu1 %707, %v334_v5   ;;  %383 = vperm.xlu0 %706, %v333_v6   ;;  %v352_v6 = vld [vmem:[%s1139_s2 + $0x38] sm:$0xff] }
  0x11   : > { %v808_v9 = vld [vmem:[%s799_s4] sm:$0xff]  ;;  %v811_v10 = vld [vmem:[%s799_s4 + $0x8] sm:$0xff]  ;;  %v814_v11 = vld [vmem:[%s799_s4 + $0x10] sm:$0xff] }
  0x12   : > { %v817_v12 = vld [vmem:[%s799_s4 + $0x18] sm:$0xff]  ;;  %v219_v13 = vsel %vm218_vm0, %v808_v9, 0.0  ;;  %v220_v14 = vsel %vm218_vm0, %v811_v10, 0.0  ;;  %v222_v15 = vsel %vm218_vm0, %v814_v11, 0.0  ;;  %v826_v16 = vld [vmem:[%s799_s4 + $0x20] sm:$0xff]  ;;  %v837_v21 = vld [vmem:[%s799_s4 + $0x28] sm:$0xff] }
  0x13   : > { %v221_v17 = vadd.f32 %v220_v14, %v219_v13  ;;  %v224_v18 = vsel %vm218_vm0, %v817_v12, 0.0  ;;  %v226_v23 = vsel %vm218_vm0, %v826_v16, 0.0  ;;  %v842_v24 = vld [vmem:[%s799_s4 + $0x30] sm:$0xff]  ;;  %v228_v26 = vsel %vm218_vm0, %v837_v21, 0.0  ;;  %v853_v29 = vld [vmem:[%s799_s4 + $0x38] sm:$0xff]  ;;  %v858_v32 = vld [vmem:[%s799_s4 + $0x40] sm:$0xff] }
  0x14   : > { %398 = vperm.xlu1 %707, %v336_v7   ;;  %393 = vperm.xlu0 %706, %v335_v8   ;;  %v230_v31 = vsel %vm218_vm0, %v842_v24, 0.0  ;;  %v232_v34 = vsel %vm218_vm0, %v853_v29, 0.0  ;;  %v869_v37 = vld [vmem:[%s799_s4 + $0x48] sm:$0xff]  ;;  %v234_v39 = vsel %vm218_vm0, %v858_v32, 0.0  ;;  %v874_v40 = vld [vmem:[%s799_s4 + $0x50] sm:$0xff]  ;;  %v885_v45 = vld [vmem:[%s799_s4 + $0x58] sm:$0xff] }
  0x15   : > { %v223_v22 = vadd.f32 %v222_v15, %v221_v17  ;;  %v236_v42 = vsel %vm218_vm0, %v869_v37, 0.0  ;;  %v238_v47 = vsel %vm218_vm0, %v874_v40, 0.0  ;;  %v890_v48 = vld [vmem:[%s799_s4 + $0x60] sm:$0xff]  ;;  %v240_v50 = vsel %vm218_vm0, %v885_v45, 0.0  ;;  %v901_v53 = vld [vmem:[%s799_s4 + $0x68] sm:$0xff]  ;;  %v906_v56 = vld [vmem:[%s799_s4 + $0x70] sm:$0xff] }
  0x16   : > { %v242_v55 = vsel %vm218_vm0, %v890_v48, 0.0  ;;  %v244_v58 = vsel %vm218_vm0, %v901_v53, 0.0  ;;  %v917_v61 = vld [vmem:[%s799_s4 + $0x78] sm:$0xff]  ;;  %v246_v63 = vsel %vm218_vm0, %v906_v56, 0.0  ;;  %v351_v7 = vld [vmem:[%s1139_s2 + $0x30] sm:$0xff]  ;;  %v354_v14 = vld [vmem:[%s1139_s2 + $0x48] sm:$0xff]  ;;  %s1068_s4 = scalar_lea.vmem %s1140_s3, %s679_s24 }
  0x17   : > { %v225_v25 = vadd.f32 %v224_v18, %v223_v22  ;;  %v248_v1 = vsel %vm218_vm0, %v917_v61, 0.0  ;;  %v353_v15 = vld [vmem:[%s1139_s2 + $0x40] sm:$0xff] }
  0x18   : > { %408 = vperm.xlu1 %707, %v338_v19   ;;  %403 = vperm.xlu0 %706, %v337_v20   ;;  %v356_v19 = vld [vmem:[%s1139_s2 + $0x58] sm:$0xff]  ;;  %v355_v20 = vld [vmem:[%s1139_s2 + $0x50] sm:$0xff] }
  0x19   : > { %v227_v30 = vadd.f32 %v226_v23, %v225_v25  ;;  %v358_v25 = vld [vmem:[%s1139_s2 + $0x68] sm:$0xff] }
  0x1b   : > { %v229_v33 = vadd.f32 %v228_v26, %v227_v30  ;;  %v357_v26 = vld [vmem:[%s1139_s2 + $0x60] sm:$0xff] }
  0x1c   : > { %418 = vperm.xlu1 %707, %v340_v27   ;;  %413 = vperm.xlu0 %706, %v339_v28  }
  0x1d   : > { %v231_v38 = vadd.f32 %v230_v31, %v229_v33  ;;  %v360_v33 = vld [vmem:[%s1139_s2 + $0x78] sm:$0xff] }
  0x1f   : > { %v233_v41 = vadd.f32 %v232_v34, %v231_v38  ;;  %v359_v34 = vld [vmem:[%s1139_s2 + $0x70] sm:$0xff] }
  0x20   : > { %428 = vperm.xlu1 %707, %v342_v35   ;;  %423 = vperm.xlu0 %706, %v341_v36  }
  0x21   : > { %v235_v46 = vadd.f32 %v234_v39, %v233_v41 }
  0x23   : > { %v237_v49 = vadd.f32 %v236_v42, %v235_v46 }
  0x24   : > { %438 = vperm.xlu1 %707, %v344_v43   ;;  %433 = vperm.xlu0 %706, %v343_v44  }
  0x25   : > { %v239_v54 = vadd.f32 %v238_v47, %v237_v49 }
  0x27   : > { %v241_v57 = vadd.f32 %v240_v50, %v239_v54 }
  0x28   : > { %480 = vperm.xlu1 %707, %v346_v51   ;;  %475 = vperm.xlu0 %706, %v345_v52  }
  0x29   : > { %v243_v62 = vadd.f32 %v242_v55, %v241_v57 }
  0x2b   : > { %v245_v0 = vadd.f32 %v244_v58, %v243_v62 }
  0x2c   : > { %490 = vperm.xlu1 %707, %v348_v59   ;;  %485 = vperm.xlu0 %706, %v347_v60  }
  0x2d   : > { %v247_v4 = vadd.f32 %v246_v63, %v245_v0 }
  0x2f   : > { %v249_v5 = vadd.f32 %v248_v1, %v247_v4 }
  0x30   : > { %500 = vperm.xlu1 %707, %v350_v2   ;;  %495 = vperm.xlu0 %706, %v349_v3  }
  0x31   : > { %v250_v8 = vrot.slane %v249_v5, 4 }
  0x33   : > { %v251_v13 = vadd.f32 %v250_v8, %v249_v5 }
  0x34   : > { %510 = vperm.xlu1 %707, %v352_v6   ;;  %505 = vperm.xlu0 %706, %v351_v7  }
  0x35   : > { %v252_v17 = vrot.slane %v251_v13, 2 }
  0x37   : > { %v253_v18 = vadd.f32 %v252_v17, %v251_v13 }
  0x38   : > { %520 = vperm.xlu1 %707, %v354_v14   ;;  %515 = vperm.xlu0 %706, %v353_v15  }
  0x39   : > { %v254_v22 = vrot.slane %v253_v18, 1 }
  0x3b   : > { %v255_v23 = vadd.f32 %v254_v22, %v253_v18 }
  0x3c   : > { %530 = vperm.xlu1 %707, %v356_v19   ;;  %525 = vperm.xlu0 %706, %v355_v20  }
  0x3d   : > { %v256_v27 = vmul.f32 0.0078125, %v255_v23 }
  0x3f   : > { %v954_v28 = vsub.f32 %v808_v9, %v256_v27  ;;  %v957_v30 = vsub.f32 %v811_v10, %v256_v27  ;;  %v960_v31 = vsub.f32 %v814_v11, %v256_v27  ;;  %v969_v35 = vsub.f32 %v817_v12, %v256_v27 }
  0x40   : > { %540 = vperm.xlu1 %707, %v358_v25   ;;  %535 = vperm.xlu0 %706, %v357_v26   ;;  %v972_v9 = vsub.f32 %v826_v16, %v256_v27  ;;  %v981_v38 = vsub.f32 %v837_v21, %v256_v27  ;;  %v986_v16 = vsub.f32 %v842_v24, %v256_v27 }
  0x41   : > { %v273_v10 = vmul.f32 %v954_v28, %v954_v28  ;;  %v274_v11 = vmul.f32 %v957_v30, %v957_v30  ;;  %v275_v36 = vmul.f32 %v960_v31, %v960_v31  ;;  %v276_v12 = vmul.f32 %v969_v35, %v969_v35 }
  0x42   : > { %v277_v39 = vmul.f32 %v972_v9, %v972_v9  ;;  %v994_v46 = vsub.f32 %v853_v29, %v256_v27  ;;  %v278_v21 = vmul.f32 %v981_v38, %v981_v38  ;;  %v1000_v49 = vsub.f32 %v858_v32, %v256_v27 }
  0x43   : > { %v289_v41 = vsel %vm218_vm0, %v273_v10, 0.0  ;;  %v290_v42 = vsel %vm218_vm0, %v274_v11, 0.0  ;;  %v292_v44 = vsel %vm218_vm0, %v275_v36, 0.0  ;;  %v294_v47 = vsel %vm218_vm0, %v276_v12, 0.0 }
  0x44   : > { %550 = vperm.xlu1 %707, %v360_v33   ;;  %545 = vperm.xlu0 %706, %v359_v34   ;;  %v291_v43 = vadd.f32 %v290_v42, %v289_v41  ;;  %v279_v50 = vmul.f32 %v986_v16, %v986_v16  ;;  %v296_v51 = vsel %vm218_vm0, %v277_v39, 0.0  ;;  %v280_v54 = vmul.f32 %v994_v46, %v994_v46 }
  0x45   : > { %v298_v29 = vsel %vm218_vm0, %v278_v21, 0.0  ;;  %v1009_v55 = vsub.f32 %v869_v37, %v256_v27  ;;  %v281_v58 = vmul.f32 %v1000_v49, %v1000_v49  ;;  %v1016_v62 = vsub.f32 %v874_v40, %v256_v27 }
  0x46   : > { %v293_v24 = vadd.f32 %v292_v44, %v291_v43  ;;  %v300_v32 = vsel %vm218_vm0, %v279_v50, 0.0  ;;  %v302_v60 = vsel %vm218_vm0, %v280_v54, 0.0  ;;  %v1022_v2 = vsub.f32 %v885_v45, %v256_v27 }
  0x47   : > { %v282_v63 = vmul.f32 %v1009_v55, %v1009_v55  ;;  %v304_v1 = vsel %vm218_vm0, %v281_v58, 0.0  ;;  %v283_v3 = vmul.f32 %v1016_v62, %v1016_v62  ;;  %v1028_v40 = vsub.f32 %v890_v48, %v256_v27 }
  0x48   : > { %v295_v52 = vadd.f32 %v294_v47, %v293_v24  ;;  %v284_v7 = vmul.f32 %v1022_v2, %v1022_v2  ;;  %v1034_v14 = vsub.f32 %v901_v53, %v256_v27  ;;  %v1040_v18 = vsub.f32 %v906_v56, %v256_v27 }
  0x49   : > { %v306_v5 = vsel %vm218_vm0, %v282_v63, 0.0  ;;  %v308_v8 = vsel %vm218_vm0, %v283_v3, 0.0  ;;  %v285_v45 = vmul.f32 %v1028_v40, %v1028_v40  ;;  %v1046_v22 = vsub.f32 %v917_v61, %v256_v27 }
  0x4a   : > { %v297_v57 = vadd.f32 %v296_v51, %v295_v52  ;;  %v310_v15 = vsel %vm218_vm0, %v284_v7, 0.0  ;;  %v286_v48 = vmul.f32 %v1034_v14, %v1034_v14  ;;  %v287_v53 = vmul.f32 %v1040_v18, %v1040_v18 }
  0x4b   : > { %v312_v19 = vsel %vm218_vm0, %v285_v45, 0.0  ;;  %v288_v26 = vmul.f32 %v1046_v22, %v1046_v22 }
  0x4c   : > { %v299_v59 = vadd.f32 %v298_v29, %v297_v57  ;;  %v314_v23 = vsel %vm218_vm0, %v286_v48, 0.0  ;;  %v316_v56 = vsel %vm218_vm0, %v287_v53, 0.0 }
  0x4d   : > { %v318_v34 = vsel %vm218_vm0, %v288_v26, 0.0 }
  0x4e   : > { %v301_v0 = vadd.f32 %v300_v32, %v299_v59 }
  0x50   : > { %v303_v37 = vadd.f32 %v302_v60, %v301_v0 }
  0x52   : > { %v305_v4 = vadd.f32 %v304_v1, %v303_v37 }
  0x54   : > { %v307_v6 = vadd.f32 %v306_v5, %v305_v4 }
  0x56   : > { %v309_v13 = vadd.f32 %v308_v8, %v307_v6 }
  0x58   : > { %v311_v17 = vadd.f32 %v310_v15, %v309_v13 }
  0x5a   : > { %v313_v20 = vadd.f32 %v312_v19, %v311_v17 }
  0x5c   : > { %v315_v25 = vadd.f32 %v314_v23, %v313_v20 }
  0x5e   : > { %v317_v33 = vadd.f32 %v316_v56, %v315_v25 }
  0x60   : > { %v319_v10 = vadd.f32 %v318_v34, %v317_v33 }
  0x62   : > { %v320_v11 = vrot.slane %v319_v10, 4 }
  0x64   : > { %v321_v36 = vadd.f32 %v320_v11, %v319_v10 }
  0x66   : > { %v322_v12 = vrot.slane %v321_v36, 2 }
  0x68   : > { %v323_v61 = vadd.f32 %v322_v12, %v321_v36 }
  0x6a   : > { %v324_v27 = vrot.slane %v323_v61, 1 }
  0x6c   : > { %v325_v42 = vadd.f32 %v324_v27, %v323_v61 }
  0x6e   : > { %v326_v21 = vmul.f32 0.0078125, %v325_v42 }
  0x70   : > { %v327_v50 = vadd.f32 1e-05, %v326_v21 }
  0x72   : > { %708 = vrsqrt.f32 %v327_v50 }
  0x7c   : > { %v1055_v32 = vpop.eup %708 }
  0x87   : > { %v374_v39 = vpop.permute.xlu1 %373  ;;  %v364_v41 = vpop.permute.xlu0 %363 }
  0x88   : > { %v441_v63 = vmul.f32 %v1055_v32, %v364_v41  ;;  %v443_v3 = vmul.f32 %v1055_v32, %v374_v39 }
  0x8a   : > { %v457_v6 = vmul.f32 %v441_v63, %v954_v28  ;;  %v459_v17 = vmul.f32 %v443_v3, %v960_v31 }
  0x8b   : > { %v379_v43 = vpop.permute.xlu1 %378  ;;  %v369_v44 = vpop.permute.xlu0 %368 }
  0x8c   : > { %v442_v0 = vmul.f32 %v1055_v32, %v369_v44  ;;  %v444_v4 = vmul.f32 %v1055_v32, %v379_v43 }
  0x8e   : > { %v458_v5 = vmul.f32 %v442_v0, %v957_v30  ;;  %v460_v28 = vmul.f32 %v444_v4, %v969_v35 }
  0x8f   : > { %v389_v47 = vpop.permute.xlu1 %388  ;;  %v384_v24 = vpop.permute.xlu0 %383 }
  0x90   : > { %v446_v15 = vmul.f32 %v1055_v32, %v389_v47  ;;  %v445_v30 = vmul.f32 %v1055_v32, %v384_v24 }
  0x92   : > { %v462_v26 = vmul.f32 %v446_v15, %v981_v38  ;;  %v461_v35 = vmul.f32 %v445_v30, %v972_v9 }
  0x93   : > { %v399_v51 = vpop.permute.xlu1 %398  ;;  %v394_v52 = vpop.permute.xlu0 %393 }
  0x94   : > { %v448_v23 = vmul.f32 %v1055_v32, %v399_v51  ;;  %v447_v25 = vmul.f32 %v1055_v32, %v394_v52 }
  0x96   : > { %v464_v36 = vmul.f32 %v448_v23, %v994_v46  ;;  %v463_v38 = vmul.f32 %v447_v25, %v986_v16 }
  0x97   : > { %v409_v54 = vpop.permute.xlu1 %408  ;;  %v404_v29 = vpop.permute.xlu0 %403 }
  0x98   : > { %v450_v10 = vmul.f32 %v1055_v32, %v409_v54  ;;  %v449_v11 = vmul.f32 %v1055_v32, %v404_v29 }
  0x9a   : > { %v466_v42 = vmul.f32 %v450_v10, %v1009_v55  ;;  %v465_v46 = vmul.f32 %v449_v11, %v1000_v49 }
  0x9b   : > { %v419_v57 = vpop.permute.xlu1 %418  ;;  %v414_v58 = vpop.permute.xlu0 %413 }
  0x9c   : > { %v452_v39 = vmul.f32 %v1055_v32, %v419_v57  ;;  %v451_v41 = vmul.f32 %v1055_v32, %v414_v58 }
  0x9e   : > { %v468_v50 = vmul.f32 %v452_v39, %v1022_v2  ;;  %v467_v55 = vmul.f32 %v451_v41, %v1016_v62 }
  0x9f   : > { %v429_v59 = vpop.permute.xlu1 %428  ;;  %v424_v60 = vpop.permute.xlu0 %423 }
  0xa0   : > { %v454_v47 = vmul.f32 %v1055_v32, %v429_v59  ;;  %v453_v24 = vmul.f32 %v1055_v32, %v424_v60 }
  0xa2   : > { %v470_v2 = vmul.f32 %v454_v47, %v1034_v14  ;;  %v469_v58 = vmul.f32 %v453_v24, %v1028_v40 }
  0xa3   : > { %v439_v1 = vpop.permute.xlu1 %438  ;;  %v434_v37 = vpop.permute.xlu0 %433 }
  0xa4   : > { %v456_v29 = vmul.f32 %v1055_v32, %v439_v1  ;;  %v455_v57 = vmul.f32 %v1055_v32, %v434_v37 }
  0xa6   : > { %v472_v32 = vmul.f32 %v456_v29, %v1046_v22  ;;  %v471_v0 = vmul.f32 %v455_v57, %v1040_v18 }
  0xa7   : > { %v481_v7 = vpop.permute.xlu1 %480  ;;  %v476_v8 = vpop.permute.xlu0 %475 }
  0xa8   : > { %v554_v13 = vadd.f32 %v481_v7, %v458_v5  ;;  %v553_v45 = vadd.f32 %v476_v8, %v457_v6 }
  0xaa   : > { %570 = vst.msk [vmem:[%s1068_s4 + $0x8] sm:$0xff] %vm218_vm0, %v554_v13  ;;  %569 = vst.msk [vmem:[%s1068_s4] sm:$0xff] %vm218_vm0, %v553_v45 }
  0xab   : > { %v491_v48 = vpop.permute.xlu1 %490  ;;  %v486_v19 = vpop.permute.xlu0 %485 }
  0xac   : > { %v556_v20 = vadd.f32 %v491_v48, %v460_v28  ;;  %v555_v53 = vadd.f32 %v486_v19, %v459_v17 }
  0xae   : > { %572 = vst.msk [vmem:[%s1068_s4 + $0x18] sm:$0xff] %vm218_vm0, %v556_v20  ;;  %571 = vst.msk [vmem:[%s1068_s4 + $0x10] sm:$0xff] %vm218_vm0, %v555_v53 }
  0xaf   : > { %v501_v56 = vpop.permute.xlu1 %500  ;;  %v496_v31 = vpop.permute.xlu0 %495 }
  0xb0   : > { %v558_v33 = vadd.f32 %v501_v56, %v462_v26  ;;  %v557_v34 = vadd.f32 %v496_v31, %v461_v35 }
  0xb2   : > { %574 = vst.msk [vmem:[%s1068_s4 + $0x28] sm:$0xff] %vm218_vm0, %v558_v33  ;;  %573 = vst.msk [vmem:[%s1068_s4 + $0x20] sm:$0xff] %vm218_vm0, %v557_v34 }
  0xb3   : > { %v511_v12 = vpop.permute.xlu1 %510  ;;  %v506_v9 = vpop.permute.xlu0 %505 }
  0xb4   : > { %v560_v61 = vadd.f32 %v511_v12, %v464_v36  ;;  %v559_v27 = vadd.f32 %v506_v9, %v463_v38 }
  0xb6   : > { %576 = vst.msk [vmem:[%s1068_s4 + $0x38] sm:$0xff] %vm218_vm0, %v560_v61  ;;  %575 = vst.msk [vmem:[%s1068_s4 + $0x30] sm:$0xff] %vm218_vm0, %v559_v27 }
  0xb7   : > { %v521_v43 = vpop.permute.xlu1 %520  ;;  %v516_v16 = vpop.permute.xlu0 %515 }
  0xb8   : > { %v562_v44 = vadd.f32 %v521_v43, %v466_v42  ;;  %v561_v21 = vadd.f32 %v516_v16, %v465_v46 }
  0xba   : > { %578 = vst.msk [vmem:[%s1068_s4 + $0x48] sm:$0xff] %vm218_vm0, %v562_v44  ;;  %577 = vst.msk [vmem:[%s1068_s4 + $0x40] sm:$0xff] %vm218_vm0, %v561_v21 }
  0xbb   : > { %v531_v49 = vpop.permute.xlu1 %530  ;;  %v526_v51 = vpop.permute.xlu0 %525 }
  0xbc   : > { %v564_v52 = vadd.f32 %v531_v49, %v468_v50  ;;  %v563_v54 = vadd.f32 %v526_v51, %v467_v55 }
  0xbe   : > { %580 = vst.msk [vmem:[%s1068_s4 + $0x58] sm:$0xff] %vm218_vm0, %v564_v52  ;;  %579 = vst.msk [vmem:[%s1068_s4 + $0x50] sm:$0xff] %vm218_vm0, %v563_v54 }
  0xbf   : > { %v541_v62 = vpop.permute.xlu1 %540  ;;  %v536_v59 = vpop.permute.xlu0 %535 }
  0xc0   : > { %v566_v60 = vadd.f32 %v541_v62, %v470_v2  ;;  %v565_v63 = vadd.f32 %v536_v59, %v469_v58 }
  0xc2   : > { %582 = vst.msk [vmem:[%s1068_s4 + $0x68] sm:$0xff] %vm218_vm0, %v566_v60  ;;  %581 = vst.msk [vmem:[%s1068_s4 + $0x60] sm:$0xff] %vm218_vm0, %v565_v63 }
  0xc3   : > { %v551_v1 = vpop.permute.xlu1 %550  ;;  %v546_v37 = vpop.permute.xlu0 %545 }
  0xc4   : > { %v568_v3 = vadd.f32 %v551_v1, %v472_v32  ;;  %v567_v4 = vadd.f32 %v546_v37, %v471_v0 }
  0xc6   : > { %584 = vst.msk [vmem:[%s1068_s4 + $0x78] sm:$0xff] %vm218_vm0, %v568_v3  ;;  %583 = vst.msk [vmem:[%s1068_s4 + $0x70] sm:$0xff] %vm218_vm0, %v567_v4 }
  0xc7 PF: > { %s13_s14 = sadd.s32 1, %s732_s14   ;;  %s1141_s12 = smov %s728_s13 }
  0xc8   : > { %p10_p5 = scmp.ge.s32.totalorder %s13_s14, 4   ;;  %s1142_s13 = smov %s1144_s15 }
  0xca   :  { %12 = sbr.rel (!%p10_p5) target bundleno = 2 (0x2), region = 62 }

</bundles_post_ra>
